<compile_context>
chip_gen: v5e
topology: v5e:2x2
jax: 0.10.0
libtpu: 0.0.40
codegen_flags: <defaults>
</compile_context>

<pallas_src>
import functools

import jax
import jax.numpy as jnp
from jax.experimental import pallas as pl
from jax.experimental.pallas import tpu as pltpu

BN_EPS = 1e-5
_STATS_CORE_SPLIT = 2                 # leading "parallel" axis of the stats grid;
                                      # shards across v7x's two TCs, harmless on 1-TC.
_FAST_PATH_BYTES = 6 * 1024 * 1024    # whole-tensor-in-VMEM fast-path budget (v7x-safe)


def _vmem_budget():
    """(vmem_limit_bytes, target_block_bytes) chosen per TPU generation."""
    try:
        cap = pltpu.get_tpu_info().vmem_capacity_bytes
    except Exception:
        cap = 64 * 1024 * 1024
    if cap >= 128 * 1024 * 1024:                       # v5e / v6e: 128 MiB VMEM
        return 96 * 1024 * 1024, 8 * 1024 * 1024
    return 48 * 1024 * 1024, 6 * 1024 * 1024           # v7x: 64 MiB per TC


def _choose_row_tile(n_rows, n_chan, itemsize, target_bytes):
    pack = max(8, 32 // itemsize)                      # 8 f32, 16 bf16, 32 int8/fp8
    rows = (target_bytes // max(1, n_chan * itemsize)) // pack * pack
    rows = max(pack, rows)
    if rows >= n_rows:
        return n_rows                                  # full-extent block: always legal
    return rows


# --------------------------------------------------------------------------- kernels

def _fused_small_kernel(x_ref, g_ref, b_ref, o_ref, *, eps):
    """Whole tensor resident in VMEM: statistics + normalize in one pass (training)."""
    x = x_ref[...].astype(jnp.float32)                         # (R, C)
    inv_n = 1.0 / x.shape[0]
    mean = jnp.sum(x, axis=0, keepdims=True) * inv_n           # (1, C)
    xc = x - mean                                              # centered -> stable var
    var = jnp.sum(xc * xc, axis=0, keepdims=True) * inv_n
    scale = g_ref[...] * jax.lax.rsqrt(var + eps)
    o_ref[...] = (xc * scale + b_ref[...]).astype(o_ref.dtype)


def _stats_kernel(x_ref, psum_ref, acc_ref, *, n_rows, row_tile,
                  tiles_per_core, needs_mask):
    """Per-core partial [sum; sum_sq] accumulated over this core's row tiles."""
    t = pl.program_id(1)

    @pl.when(t == 0)
    def _():
        acc_ref[...] = jnp.zeros_like(acc_ref)

    x = x_ref[...].astype(jnp.float32)                         # (row_tile, C)
    if needs_mask:                                             # static Python check
        g = pl.program_id(0) * tiles_per_core + t              # global (unclamped) tile
        row = jax.lax.broadcasted_iota(jnp.int32, (row_tile, 1), 0)
        x = jnp.where(g * row_tile + row < n_rows, x, 0.0)

    acc_ref[0:1, :] = acc_ref[0:1, :] + jnp.sum(x, axis=0, keepdims=True)
    acc_ref[1:2, :] = acc_ref[1:2, :] + jnp.sum(x * x, axis=0, keepdims=True)

    @pl.when(t == pl.num_programs(1) - 1)
    def _():
        psum_ref[...] = acc_ref[...].reshape(psum_ref.shape)   # write (1, 2, C) once


def _norm_train_kernel(x_ref, psums_ref, g_ref, b_ref, o_ref, *, inv_n, eps):
    """Reduce per-core partials, fold BN into one per-channel affine, apply it."""
    totals = jnp.sum(psums_ref[...], axis=0)                   # (2, C), tiny
    mean = totals[0:1, :] * inv_n
    var = jnp.maximum(totals[1:2, :] * inv_n - mean * mean, 0.0)   # biased var (fwd)
    scale = g_ref[...] * jax.lax.rsqrt(var + eps)              # (1, C)
    shift = b_ref[...] - mean * scale
    x = x_ref[...].astype(jnp.float32)
    o_ref[...] = (x * scale + shift).astype(o_ref.dtype)


def _norm_affine_kernel(x_ref, p_ref, o_ref):
    """y = x*scale + shift with precomputed (2, C) [scale; shift] (eval mode)."""
    x = x_ref[...].astype(jnp.float32)
    o_ref[...] = (x * p_ref[0:1, :] + p_ref[1:2, :]).astype(o_ref.dtype)


# --------------------------------------------------------------------------- wrapper

def batchnorm1d_tbc_forward(x, gamma, beta, running_mean=None, running_var=None,
                            *, training=True, eps=BN_EPS, row_tile=None):
    """x: (T, B, C). Returns (T, B, C) with the same dtype as x."""
    T, B, C = x.shape
    R = T * B
    x2 = x.reshape(R, C)                       # contiguous collapse: free layout change
    itemsize = jnp.dtype(x.dtype).itemsize
    vmem_limit, target_block = _vmem_budget()
    g32 = gamma.astype(jnp.float32).reshape(1, C)
    b32 = beta.astype(jnp.float32).reshape(1, C)

    # ---- small-tensor fused fast path (training): one kernel, tensor stays in VMEM.
    if training and row_tile is None and R * C * (2 * itemsize + 12) <= _FAST_PATH_BYTES:
        out = pl.pallas_call(
            functools.partial(_fused_small_kernel, eps=eps),
            out_shape=jax.ShapeDtypeStruct((R, C), x.dtype),
            compiler_params=pltpu.CompilerParams(vmem_limit_bytes=vmem_limit),
        )(x2, g32, b32)
        return out.reshape(T, B, C)

    if row_tile is None:
        row_tile = _choose_row_tile(R, C, itemsize, target_block)
    num_tiles = pl.cdiv(R, row_tile)

    if training:
        # ---- pass 1: per-core partial [sum, sum_sq], sharded across TensorCores.
        split = _STATS_CORE_SPLIT if num_tiles >= _STATS_CORE_SPLIT else 1
        tpc = pl.cdiv(num_tiles, split)
        needs_mask = (R % row_tile != 0) or (split * tpc != num_tiles)

        psums = pl.pallas_call(
            functools.partial(_stats_kernel, n_rows=R, row_tile=row_tile,
                              tiles_per_core=tpc, needs_mask=needs_mask),
            out_shape=jax.ShapeDtypeStruct((split, 2, C), jnp.float32),
            grid_spec=pltpu.PrefetchScalarGridSpec(
                num_scalar_prefetch=0,
                grid=(split, tpc),
                in_specs=[pl.BlockSpec(
                    (row_tile, C),
                    lambda c, t: (jnp.minimum(c * tpc + t, num_tiles - 1), 0))],
                out_specs=pl.BlockSpec((1, 2, C), lambda c, t: (c, 0, 0)),
                scratch_shapes=[pltpu.VMEM((2, C), jnp.float32)],
            ),
            compiler_params=pltpu.CompilerParams(
                dimension_semantics=("parallel", "arbitrary"),
                vmem_limit_bytes=vmem_limit),
        )(x2)

        # ---- pass 2: normalize; epilogue (reduce partials, rsqrt, fold affine) fused
        #      into the kernel so no tiny (C,)-sized XLA ops sit between the calls.
        out = pl.pallas_call(
            functools.partial(_norm_train_kernel, inv_n=1.0 / R, eps=eps),
            out_shape=jax.ShapeDtypeStruct((R, C), x.dtype),
            grid_spec=pltpu.PrefetchScalarGridSpec(
                num_scalar_prefetch=0,
                grid=(num_tiles,),
                in_specs=[pl.BlockSpec((row_tile, C), lambda i: (i, 0)),
                          pl.BlockSpec((split, 2, C), lambda i: (0, 0, 0)),
                          pl.BlockSpec((1, C), lambda i: (0, 0)),
                          pl.BlockSpec((1, C), lambda i: (0, 0))],
                out_specs=pl.BlockSpec((row_tile, C), lambda i: (i, 0)),
            ),
            compiler_params=pltpu.CompilerParams(
                dimension_semantics=("parallel",),       # shards across v7x TCs
                vmem_limit_bytes=vmem_limit),
        )(x2, psums, g32, b32)
        return out.reshape(T, B, C)

    # ---- eval mode: running statistics, single lane-dense affine pass.
    rv = running_var.astype(jnp.float32).reshape(1, C)
    rm = running_mean.astype(jnp.float32).reshape(1, C)
    scale = g32 * jax.lax.rsqrt(rv + eps)
    shift = b32 - rm * scale
    p = jnp.concatenate([scale, shift], axis=0)              # (2, C) f32

    out = pl.pallas_call(
        _norm_affine_kernel,
        out_shape=jax.ShapeDtypeStruct((R, C), x.dtype),
        grid_spec=pltpu.PrefetchScalarGridSpec(
            num_scalar_prefetch=0,
            grid=(num_tiles,),
            in_specs=[pl.BlockSpec((row_tile, C), lambda i: (i, 0)),
                      pl.BlockSpec((2, C), lambda i: (0, 0))],
            out_specs=pl.BlockSpec((row_tile, C), lambda i: (i, 0)),
        ),
        compiler_params=pltpu.CompilerParams(
            dimension_semantics=("parallel",),
            vmem_limit_bytes=vmem_limit),
    )(x2, p)
    return out.reshape(T, B, C)


# ------------------------------------------------------------------------- reference

def _reference(x, gamma, beta, running_mean, running_var, *, training, eps=BN_EPS):
    """Pure-JAX reference of BatchNorm1dTBC.forward (stats over T and B per channel)."""
    xf = x.astype(jnp.float32)
    if training:
        mean = jnp.mean(xf, axis=(0, 1))
        var = jnp.mean((xf - mean) ** 2, axis=(0, 1))
    else:
        mean = running_mean.astype(jnp.float32)
        var = running_var.astype(jnp.float32)
    y = (xf - mean) * jax.lax.rsqrt(var + eps) * gamma + beta
    return y.astype(x.dtype)


if __name__ == "__main__":
    # C = 128 keeps the channel (lane) dim dense -> unmasked vector loads/stores.
    T, B, C = 64, 2, 128

    key = jax.random.PRNGKey(0)
    kx, kg, kb, km, kv = jax.random.split(key, 5)
    x = jax.random.normal(kx, (T, B, C), jnp.float32)
    gamma = 1.0 + 0.1 * jax.random.normal(kg, (C,), jnp.float32)
    beta = 0.1 * jax.random.normal(kb, (C,), jnp.float32)
    running_mean = 0.1 * jax.random.normal(km, (C,), jnp.float32)
    running_var = 1.0 + 0.1 * jax.random.uniform(kv, (C,), jnp.float32)

    ref_tr = jax.block_until_ready(_reference(x, gamma, beta, None, None, training=True))
    ref_ev = jax.block_until_ready(
        _reference(x, gamma, beta, running_mean, running_var, training=False))

    # 1) training, fused whole-in-VMEM fast path (default for this small shape).
    out_fast = jax.block_until_ready(
        batchnorm1d_tbc_forward(x, gamma, beta, training=True))
    assert out_fast.shape == (T, B, C)
    assert jnp.allclose(out_fast, ref_tr, atol=1e-4, rtol=1e-4), "fast-path mismatch"

    # 2) training, tiled two-pass path (even tile count: no masking, even core split).
    out_tiled = jax.block_until_ready(
        batchnorm1d_tbc_forward(x, gamma, beta, training=True, row_tile=32))
    assert jnp.allclose(out_tiled, ref_tr, atol=1e-4, rtol=1e-4), "tiled-path mismatch"

    # 3) training, tiled path with a partial last tile + uneven core split
    #    (exercises the row mask and the clamped index_map).
    out_mask = jax.block_until_ready(
        batchnorm1d_tbc_forward(x, gamma, beta, training=True, row_tile=48))
    assert jnp.allclose(out_mask, ref_tr, atol=1e-4, rtol=1e-4), "masked-path mismatch"

    # 4) eval mode with running statistics.
    out_ev = jax.block_until_ready(
        batchnorm1d_tbc_forward(x, gamma, beta, running_mean, running_var,
                                training=False))
    assert jnp.allclose(out_ev, ref_ev, atol=1e-4, rtol=1e-4), "eval-mode mismatch"

    print("KERNEL_OK")
</pallas_src>

<mosaic_0001>
module attributes {stable_mosaic.version = 11 : i64} {
  func.func @_fused_small_kernel(%arg0: memref<128x128xf32, #tpu.memory_space<vmem>>, %arg1: memref<1x128xf32, #tpu.memory_space<vmem>>, %arg2: memref<1x128xf32, #tpu.memory_space<vmem>>, %arg3: memref<128x128xf32, #tpu.memory_space<vmem>>) attributes {dimension_semantics = [], scalar_prefetch = 0 : i64, scratch_operands = 0 : i64, tpu.core_type = #tpu.core_type<tc>} {
    %c0 = arith.constant 0 : index
    %c0_0 = arith.constant 0 : index
    %0 = vector.load %arg0[%c0, %c0_0] : memref<128x128xf32, #tpu.memory_space<vmem>>, vector<128x128xf32>
    %cst = arith.constant dense<0.000000e+00> : vector<128xf32>
    %1 = vector.multi_reduction <add>, %0, %cst [0] : vector<128x128xf32> to vector<128xf32>
    %2 = vector.shape_cast %1 : vector<128xf32> to vector<1x128xf32>
    %cst_1 = arith.constant 7.812500e-03 : f32
    %3 = vector.broadcast %cst_1 : f32 to vector<1x128xf32>
    %4 = arith.mulf %2, %3 : vector<1x128xf32>
    %5 = vector.broadcast %4 : vector<1x128xf32> to vector<128x128xf32>
    %6 = arith.subf %0, %5 : vector<128x128xf32>
    %7 = arith.mulf %6, %6 : vector<128x128xf32>
    %cst_2 = arith.constant dense<0.000000e+00> : vector<128xf32>
    %8 = vector.multi_reduction <add>, %7, %cst_2 [0] : vector<128x128xf32> to vector<128xf32>
    %9 = vector.shape_cast %8 : vector<128xf32> to vector<1x128xf32>
    %cst_3 = arith.constant 7.812500e-03 : f32
    %10 = vector.broadcast %cst_3 : f32 to vector<1x128xf32>
    %11 = arith.mulf %9, %10 : vector<1x128xf32>
    %c0_4 = arith.constant 0 : index
    %c0_5 = arith.constant 0 : index
    %12 = vector.load %arg1[%c0_4, %c0_5] : memref<1x128xf32, #tpu.memory_space<vmem>>, vector<1x128xf32>
    %cst_6 = arith.constant 9.99999974E-6 : f32
    %13 = vector.broadcast %cst_6 : f32 to vector<1x128xf32>
    %14 = arith.addf %11, %13 : vector<1x128xf32>
    %15 = math.rsqrt %14 : vector<1x128xf32>
    %16 = arith.mulf %12, %15 : vector<1x128xf32>
    %17 = vector.broadcast %16 : vector<1x128xf32> to vector<128x128xf32>
    %18 = arith.mulf %6, %17 : vector<128x128xf32>
    %c0_7 = arith.constant 0 : index
    %c0_8 = arith.constant 0 : index
    %19 = vector.load %arg2[%c0_7, %c0_8] : memref<1x128xf32, #tpu.memory_space<vmem>>, vector<1x128xf32>
    %20 = vector.broadcast %19 : vector<1x128xf32> to vector<128x128xf32>
    %21 = arith.addf %18, %20 : vector<128x128xf32>
    %c0_9 = arith.constant 0 : index
    %c0_10 = arith.constant 0 : index
    %22 = vector.load %arg3[%c0_9, %c0_10] : memref<128x128xf32, #tpu.memory_space<vmem>>, vector<128x128xf32>
    tpu.vector_store %arg3[%c0_9, %c0_10], %21 {strides = array<i32>} : memref<128x128xf32, #tpu.memory_space<vmem>>, vector<128x128xf32>,
    return
  }
}

</mosaic_0001>

<bundles_post_ra>
// kernel: tpu_custom_call.1
= control target key start
LH: loop header
LB: loop body
LE: loop exit
PB: predicated region body
PF: predicated region fallthrough
CT: control target
= control target key end

     0   :  { %8 = vsyncpa [#allocation3], 0  ;;  %s434_s0 = inlined_call_operand.hbm [shape: f32[128,128], index: 0, kind: input, shape index: {}]   ;;  %s435_s1 = inlined_call_operand.hbm [shape: f32[1,128], index: 1, kind: input, shape index: {}]   ;;  %s436_s2 = inlined_call_operand.vmem [shape: f32[1,128], index: 2, kind: input, shape index: {}]   ;;  %s437_s3 = inlined_call_operand.hbm [shape: f32[128,128], index: 3, kind: output, shape index: {}]  }
   0x1   :  { %9 = vsyncpa [#allocation6], 0 }
   0x2   :  { %10 = vsyncpa [#allocation4], 0  ;;  %s15_s14 = sshll.u32 %s434_s0, 4  ;;  %s311_s15 = smov [#allocation2]   ;;  %s16_s14 = int_to_ptr.hbm [resolvable:$true] %s15_s14 }
   0x3   :  { %s17_s16 = sshll.u32 %s311_s15, 4  ;;  %s29_s19 = sshll.u32 %s435_s1, 4  ;;  %s18_s16 = int_to_ptr.vmem [resolvable:$true] %s17_s16  ;;  %s30_s19 = int_to_ptr.hbm [resolvable:$true] %s29_s19 }
   0x4   :  { %s312_s20 = smov 128   ;;  %s313_s21 = smov 8  }
   0x5   :  { %23 = dma.hbm_to_vmem [thread:$0]  %s16_s14, 2048, %s18_s16, [#allocation3], %s312_s20, %s312_s20, %s313_s21  }
   0x6   :  { %s314_s22 = smov [#allocation5]  }
   0x7   :  { %s31_s23 = sshll.u32 %s314_s22, 4  ;;  %s32_s23 = int_to_ptr.vmem [resolvable:$true] %s31_s23 }
   0x8   :  { %34 = dma.hbm_to_vmem [thread:$0]  %s30_s19, 16, %s32_s23, [#allocation6]  }
   0x9   :  { %305 = dma.done.wait [#allocation3], 2048  }
   0xa   :  { %306 = vsyncadd [#allocation3], 4294965248 }
   0xb   :  { %307 = dma.done.wait [#allocation6], 16  }
   0xc   :  { %308 = vsyncadd [#allocation6], 4294967280  ;;  %v45_v0 = vld [vmem:[#allocation2] sm:$0xff]  ;;  %v46_v1 = vld [vmem:[#allocation2 + $0x8] sm:$0xff]  ;;  %s211_s27 = sshll.u32 %s437_s3, 4  ;;  %s212_s27 = int_to_ptr.hbm [resolvable:$true] %s211_s27 }
   0xd   :  { %v47_v2 = vld [vmem:[#allocation2 + $0x10] sm:$0xff]  ;;  %v61_v3 = vadd.f32 %v46_v1, %v45_v0  ;;  %v48_v4 = vld [vmem:[#allocation2 + $0x18] sm:$0xff]  ;;  %v49_v6 = vld [vmem:[#allocation2 + $0x20] sm:$0xff] }
   0xe   :  { %v50_v8 = vld [vmem:[#allocation2 + $0x28] sm:$0xff]  ;;  %v51_v10 = vld [vmem:[#allocation2 + $0x30] sm:$0xff]  ;;  %v52_v12 = vld [vmem:[#allocation2 + $0x38] sm:$0xff] }
   0xf   :  { %v62_v5 = vadd.f32 %v61_v3, %v47_v2  ;;  %v53_v14 = vld [vmem:[#allocation2 + $0x40] sm:$0xff]  ;;  %v54_v16 = vld [vmem:[#allocation2 + $0x48] sm:$0xff]  ;;  %v55_v18 = vld [vmem:[#allocation2 + $0x50] sm:$0xff] }
  0x10   :  { %v56_v20 = vld [vmem:[#allocation2 + $0x58] sm:$0xff]  ;;  %v57_v22 = vld [vmem:[#allocation2 + $0x60] sm:$0xff]  ;;  %v58_v24 = vld [vmem:[#allocation2 + $0x68] sm:$0xff] }
  0x11   :  { %v63_v7 = vadd.f32 %v62_v5, %v48_v4  ;;  %v59_v26 = vld [vmem:[#allocation2 + $0x70] sm:$0xff]  ;;  %v60_v28 = vld [vmem:[#allocation2 + $0x78] sm:$0xff] }
  0x13   :  { %v64_v9 = vadd.f32 %v63_v7, %v49_v6 }
  0x15   :  { %v65_v11 = vadd.f32 %v64_v9, %v50_v8 }
  0x17   :  { %v66_v13 = vadd.f32 %v65_v11, %v51_v10 }
  0x19   :  { %v67_v15 = vadd.f32 %v66_v13, %v52_v12 }
  0x1b   :  { %v68_v17 = vadd.f32 %v67_v15, %v53_v14 }
  0x1d   :  { %v69_v19 = vadd.f32 %v68_v17, %v54_v16 }
  0x1f   :  { %v70_v21 = vadd.f32 %v69_v19, %v55_v18 }
  0x21   :  { %v71_v23 = vadd.f32 %v70_v21, %v56_v20 }
  0x23   :  { %v72_v25 = vadd.f32 %v71_v23, %v57_v22 }
  0x25   :  { %v73_v27 = vadd.f32 %v72_v25, %v58_v24 }
  0x27   :  { %v74_v29 = vadd.f32 %v73_v27, %v59_v26 }
  0x29   :  { %v75_v30 = vadd.f32 %v74_v29, %v60_v28 }
  0x2b   :  { %v76_v31 = vrot.slane %v75_v30, 4 }
  0x2d   :  { %v77_v32 = vadd.f32 %v76_v31, %v75_v30 }
  0x2f   :  { %v78_v33 = vrot.slane %v77_v32, 2 }
  0x31   :  { %v79_v34 = vadd.f32 %v78_v33, %v77_v32 }
  0x33   :  { %v80_v35 = vrot.slane %v79_v34, 1 }
  0x35   :  { %v81_v36 = vadd.f32 %v80_v35, %v79_v34  ;;  %v137_v34 = vld [vmem:[#allocation5] sm:$0x1] }
  0x37   :  { %v82_v37 = vmul.f32 0.0078125, %v81_v36 }
  0x39   :  { %v345_v38 = vsub.f32 %v45_v0, %v82_v37  ;;  %v347_v39 = vsub.f32 %v46_v1, %v82_v37  ;;  %v349_v40 = vsub.f32 %v47_v2, %v82_v37  ;;  %v351_v41 = vsub.f32 %v48_v4, %v82_v37 }
  0x3a   :  { %v357_v44 = vsub.f32 %v49_v6, %v82_v37  ;;  %v361_v46 = vsub.f32 %v50_v8, %v82_v37  ;;  %v365_v49 = vsub.f32 %v51_v10, %v82_v37  ;;  %v369_v52 = vsub.f32 %v52_v12, %v82_v37 }
  0x3b   :  { %v99_v42 = vmul.f32 %v345_v38, %v345_v38  ;;  %v100_v43 = vmul.f32 %v347_v39, %v347_v39  ;;  %v101_v45 = vmul.f32 %v349_v40, %v349_v40  ;;  %v102_v47 = vmul.f32 %v351_v41, %v351_v41 }
  0x3c   :  { %v103_v50 = vmul.f32 %v357_v44, %v357_v44  ;;  %v104_v53 = vmul.f32 %v361_v46, %v361_v46  ;;  %v373_v55 = vsub.f32 %v53_v14, %v82_v37  ;;  %v105_v56 = vmul.f32 %v365_v49, %v365_v49 }
  0x3d   :  { %v115_v48 = vadd.f32 %v100_v43, %v99_v42  ;;  %v377_v58 = vsub.f32 %v54_v16, %v82_v37  ;;  %v106_v59 = vmul.f32 %v369_v52, %v369_v52  ;;  %v381_v61 = vsub.f32 %v55_v18, %v82_v37  ;;  %v230_v43 = vld [vmem:[%s436_s2] ss:$0 sm:$0xff]  ;;  %s315_s2 = smov [#allocation7]  }
  0x3e   :  { %v107_v62 = vmul.f32 %v373_v55, %v373_v55  ;;  %v385_v0 = vsub.f32 %v56_v20, %v82_v37  ;;  %v389_v3 = vsub.f32 %v57_v22, %v82_v37  ;;  %v393_v6 = vsub.f32 %v58_v24, %v82_v37  ;;  %s209_s24 = sshll.u32 %s315_s2, 4  ;;  %s210_s24 = int_to_ptr.vmem [resolvable:$true] %s209_s24 }
  0x3f   :  { %v116_v51 = vadd.f32 %v115_v48, %v101_v45  ;;  %v108_v1 = vmul.f32 %v377_v58, %v377_v58  ;;  %v109_v4 = vmul.f32 %v381_v61, %v381_v61  ;;  %v397_v9 = vsub.f32 %v59_v26, %v82_v37 }
  0x40   :  { %v110_v7 = vmul.f32 %v385_v0, %v385_v0  ;;  %v111_v10 = vmul.f32 %v389_v3, %v389_v3  ;;  %v401_v12 = vsub.f32 %v60_v28, %v82_v37  ;;  %v112_v13 = vmul.f32 %v393_v6, %v393_v6 }
  0x41   :  { %v117_v54 = vadd.f32 %v116_v51, %v102_v47  ;;  %v113_v15 = vmul.f32 %v397_v9, %v397_v9 }
  0x42   :  { %v114_v17 = vmul.f32 %v401_v12, %v401_v12 }
  0x43   :  { %v118_v57 = vadd.f32 %v117_v54, %v103_v50 }
  0x45   :  { %v119_v60 = vadd.f32 %v118_v57, %v104_v53 }
  0x47   :  { %v120_v63 = vadd.f32 %v119_v60, %v105_v56 }
  0x49   :  { %v121_v2 = vadd.f32 %v120_v63, %v106_v59 }
  0x4b   :  { %v122_v5 = vadd.f32 %v121_v2, %v107_v62 }
  0x4d   :  { %v123_v8 = vadd.f32 %v122_v5, %v108_v1 }
  0x4f   :  { %v124_v11 = vadd.f32 %v123_v8, %v109_v4 }
  0x51   :  { %v125_v14 = vadd.f32 %v124_v11, %v110_v7 }
  0x53   :  { %v126_v16 = vadd.f32 %v125_v14, %v111_v10 }
  0x55   :  { %v127_v18 = vadd.f32 %v126_v16, %v112_v13 }
  0x57   :  { %v128_v19 = vadd.f32 %v127_v18, %v113_v15 }
  0x59   :  { %v129_v20 = vadd.f32 %v128_v19, %v114_v17 }
  0x5b   :  { %v130_v21 = vrot.slane %v129_v20, 4 }
  0x5d   :  { %v131_v22 = vadd.f32 %v130_v21, %v129_v20 }
  0x5f   :  { %v132_v23 = vrot.slane %v131_v22, 2 }
  0x61   :  { %v133_v24 = vadd.f32 %v132_v23, %v131_v22 }
  0x63   :  { %v134_v25 = vrot.slane %v133_v24, 1 }
  0x65   :  { %v135_v26 = vadd.f32 %v134_v25, %v133_v24 }
  0x67   :  { %v136_v27 = vmul.f32 0.0078125, %v135_v26 }
  0x69   :  { %v138_v28 = vadd.f32 1e-05, %v136_v27 }
  0x6b   :  { %231 = vrsqrt.f32 %v138_v28  ;;  %vm145_vm0 = vweird.f32 %v138_v28 }
  0x71   :  { %v232_v29 = vpop.eup %231 }
  0x72   :  { %v140_v30 = vmul.f32 %v232_v29, %v138_v28  ;;  %vm146_vm1 = vweird.f32 %v232_v29 }
  0x73   :  { %vm147_vm2 = vmor %vm145_vm0, %vm146_vm1 }
  0x74   :  { %v141_v31 = vmul.f32 %v232_v29, %v140_v30 }
  0x76   :  { %v142_v32 = vmul.f32 0.5, %v141_v31 }
  0x78   :  { %v143_v33 = vsub.f32 1.5, %v142_v32 }
  0x7a   :  { %v144_v35 = vmul.f32 %v232_v29, %v143_v33 }
  0x7c   :  { %v148_v36 = vsel %vm147_vm2, %v232_v29, %v144_v35 }
  0x7d   :  { %v149_v37 = vmul.f32 %v148_v36, %v137_v34 }
  0x7f   :  { %v151_v42 = vperm.slane %v149_v37, 0 }
  0x81   :  { %v153_v45 = vmul.f32 %v151_v42, %v345_v38  ;;  %v154_v47 = vmul.f32 %v151_v42, %v347_v39  ;;  %v155_v48 = vmul.f32 %v151_v42, %v349_v40  ;;  %v156_v50 = vmul.f32 %v151_v42, %v351_v41 }
  0x82   :  { %v157_v51 = vmul.f32 %v151_v42, %v357_v44  ;;  %v158_v53 = vmul.f32 %v151_v42, %v361_v46  ;;  %v159_v59 = vmul.f32 %v151_v42, %v365_v49  ;;  %v160_v62 = vmul.f32 %v151_v42, %v369_v52 }
  0x83   :  { %v173_v54 = vadd.f32 %v230_v43, %v153_v45  ;;  %v174_v56 = vadd.f32 %v230_v43, %v154_v47  ;;  %v175_v57 = vadd.f32 %v230_v43, %v155_v48  ;;  %v176_v60 = vadd.f32 %v230_v43, %v156_v50 }
  0x84   :  { %v177_v38 = vadd.f32 %v230_v43, %v157_v51  ;;  %v161_v39 = vmul.f32 %v151_v42, %v373_v55  ;;  %v178_v40 = vadd.f32 %v230_v43, %v158_v53  ;;  %v162_v41 = vmul.f32 %v151_v42, %v377_v58 }
  0x85   :  { %189 = vst [vmem:[#allocation7] sm:$0xff] %v173_v54  ;;  %v179_v44 = vadd.f32 %v230_v43, %v159_v59  ;;  %v163_v46 = vmul.f32 %v151_v42, %v381_v61  ;;  %v180_v63 = vadd.f32 %v230_v43, %v160_v62  ;;  %v164_v1 = vmul.f32 %v151_v42, %v385_v0 }
  0x86   :  { %190 = vst [vmem:[#allocation7 + $0x8] sm:$0xff] %v174_v56  ;;  %v181_v49 = vadd.f32 %v230_v43, %v161_v39  ;;  %v165_v52 = vmul.f32 %v151_v42, %v389_v3  ;;  %v182_v2 = vadd.f32 %v230_v43, %v162_v41  ;;  %v166_v55 = vmul.f32 %v151_v42, %v393_v6 }
  0x87   :  { %191 = vst [vmem:[#allocation7 + $0x10] sm:$0xff] %v175_v57  ;;  %v183_v4 = vadd.f32 %v230_v43, %v163_v46  ;;  %v167_v58 = vmul.f32 %v151_v42, %v397_v9  ;;  %v184_v5 = vadd.f32 %v230_v43, %v164_v1  ;;  %v168_v61 = vmul.f32 %v151_v42, %v401_v12 }
  0x88   :  { %192 = vst [vmem:[#allocation7 + $0x18] sm:$0xff] %v176_v60  ;;  %v185_v7 = vadd.f32 %v230_v43, %v165_v52  ;;  %v186_v0 = vadd.f32 %v230_v43, %v166_v55 }
  0x89   :  { %193 = vst [vmem:[#allocation7 + $0x20] sm:$0xff] %v177_v38  ;;  %v187_v8 = vadd.f32 %v230_v43, %v167_v58  ;;  %v188_v3 = vadd.f32 %v230_v43, %v168_v61 }
  0x8a   :  { %194 = vst [vmem:[#allocation7 + $0x28] sm:$0xff] %v178_v40 }
  0x8b   :  { %195 = vst [vmem:[#allocation7 + $0x30] sm:$0xff] %v179_v44 }
  0x8c   :  { %196 = vst [vmem:[#allocation7 + $0x38] sm:$0xff] %v180_v63 }
  0x8d   :  { %197 = vst [vmem:[#allocation7 + $0x40] sm:$0xff] %v181_v49 }
  0x8e   :  { %198 = vst [vmem:[#allocation7 + $0x48] sm:$0xff] %v182_v2 }
  0x8f   :  { %199 = vst [vmem:[#allocation7 + $0x50] sm:$0xff] %v183_v4 }
  0x90   :  { %200 = vst [vmem:[#allocation7 + $0x58] sm:$0xff] %v184_v5 }
  0x91   :  { %201 = vst [vmem:[#allocation7 + $0x60] sm:$0xff] %v185_v7 }
  0x92   :  { %202 = vst [vmem:[#allocation7 + $0x68] sm:$0xff] %v186_v0 }
  0x93   :  { %203 = vst [vmem:[#allocation7 + $0x70] sm:$0xff] %v187_v8 }
  0x94   :  { %204 = vst [vmem:[#allocation7 + $0x78] sm:$0xff] %v188_v3 }
  0x95   :  { %217 = dma.vmem_to_hbm [thread:$0]  %s210_s24, 2048, %s212_s27, [#allocation4], %s312_s20, %s312_s20, %s313_s21  }
  0x96   :  { %309 = dma.done.wait [#allocation4], 2048  }
  0x97   :  { %310 = vsyncadd [#allocation4], 4294965248 }
  0x98   :  { %222 = vsyncpa [#allocation3], 1 }
  0x99   :  { %223 = vsyncpa [#allocation6], 1 }
  0x9a   :  { %224 = vsyncpa [#allocation4], 1 }

</bundles_post_ra>
